<compile_context>
chip_gen: v7x
topology: tpu7x:2x2x1
jax: 0.10.0
libtpu: 0.0.40
codegen_flags: <defaults>
</compile_context>

<pallas_src>
import jax
import jax.numpy as jnp
from jax.experimental import pallas as pl
from jax.experimental.pallas import tpu as pltpu


def _round_up(v, m):
    return ((v + m - 1) // m) * m


def tanh_gru_cell_kernel(xh_ref, w1_ref, whh_n_ref, b_ref, out_ref):
    Hp = out_ref.shape[-1]                      # 128-lane padded hidden width

    xh = xh_ref[...]                            # (bn, I+H) bf16
    # One fused MXU matmul for all gate pre-activations + an identity copy of h:
    #   g[:, 0:Hp]      = x@Wih0.T + h@Whh0.T + b0      (z gate)
    #   g[:, Hp:2Hp]    = x@Wih1.T + h@Whh1.T + b1      (r gate)
    #   g[:, 2Hp:3Hp]   = x@Wih2.T            + b2      (n input part)
    #   g[:, 3Hp:4Hp]   = h (identity block, bias 0)    (lane-padded h)
    g = jnp.dot(xh, w1_ref[...], preferred_element_type=jnp.float32) + b_ref[...]

    z = jax.nn.sigmoid(g[:, 0 * Hp:1 * Hp])     # (bn, Hp) f32, vreg-aligned slice
    r = jax.nn.sigmoid(g[:, 1 * Hp:2 * Hp])
    h_pad = g[:, 3 * Hp:4 * Hp]                 # f32 copy of (bf16) h, zero-padded lanes

    # Candidate: reset gate applied to h BEFORE the hh matmul (torch.mv(W_hh[2], h*r)).
    hr = (h_pad * r).astype(whh_n_ref.dtype)    # (bn, Hp) bf16, lane-dense operand
    n = jnp.tanh(g[:, 2 * Hp:3 * Hp] +
                 jnp.dot(hr, whh_n_ref[...], preferred_element_type=jnp.float32))

    out_ref[...] = ((1.0 - z) * n + z * h_pad).astype(out_ref.dtype)


def prepare_tanh_gru_params(weight_ih, weight_hh, bias, *, compute_dtype=jnp.bfloat16):
    """One-time (init-time) weight fusion.

    weight_ih: (3, H, I), weight_hh: (3, H, H), bias: (3, H).
    Returns:
      w1:    (I+H, 4*Hp) compute_dtype  -- [z | r | n_input | identity(h)] blocks
      whh_n: (Hp, Hp)    compute_dtype  -- W_hh[2].T zero-padded
      b_cat: (1, 4*Hp)   float32        -- [b0 | b1 | b2 | 0] blocks
    """
    _, H, I = weight_ih.shape
    Hp = max(128, _round_up(H, 128))            # pad each gate to full 128-lane groups

    def padg(w):                                # (rows, H) -> (rows, Hp)
        return jnp.pad(w, ((0, 0), (0, Hp - H)))

    x_rows = jnp.concatenate(
        [padg(weight_ih[0].T), padg(weight_ih[1].T), padg(weight_ih[2].T),
         jnp.zeros((I, Hp), weight_ih.dtype)], axis=1)                    # (I, 4*Hp)
    h_rows = jnp.concatenate(
        [padg(weight_hh[0].T), padg(weight_hh[1].T),
         jnp.zeros((H, Hp), weight_hh.dtype),
         padg(jnp.eye(H, dtype=weight_hh.dtype))], axis=1)                # (H, 4*Hp)
    w1 = jnp.concatenate([x_rows, h_rows], axis=0).astype(compute_dtype)  # (I+H, 4*Hp)

    whh_n = jnp.zeros((Hp, Hp), weight_hh.dtype).at[:H, :H].set(weight_hh[2].T)
    whh_n = whh_n.astype(compute_dtype)

    b_cat = jnp.concatenate(
        [jnp.pad(bias[0], (0, Hp - H)),
         jnp.pad(bias[1], (0, Hp - H)),
         jnp.pad(bias[2], (0, Hp - H)),
         jnp.zeros((Hp,), bias.dtype)]).reshape(1, 4 * Hp).astype(jnp.float32)
    return w1, whh_n, b_cat


def tanh_gru_cell(x, hx, w1, whh_n, b_cat, *, block_n=2048):
    """x: (N, I), hx: (N, H); weights pre-fused via prepare_tanh_gru_params."""
    N, I = x.shape
    H = hx.shape[1]
    Hp = whh_n.shape[-1]
    K = I + H
    out_dtype = hx.dtype
    compute_dtype = w1.dtype

    # Stream [x | h] as a single bf16 array (halves activation HBM bytes, one
    # lane-dense matmul operand).  In a real pipeline produce x/h in this layout.
    xh = jnp.concatenate([x, hx], axis=1).astype(compute_dtype)           # (N, I+H)

    # Batch tiling: big tiles to amortize per-step overhead, sublane-aligned,
    # and >= 2 grid steps whenever possible so v7x megacore can shard the
    # "parallel" batch axis across both TensorCores.
    n_aligned = _round_up(max(N, 1), 8)
    if n_aligned <= block_n:
        bn = _round_up(n_aligned // 2, 16) if n_aligned >= 32 else n_aligned
    else:
        n_tiles = pl.cdiv(n_aligned, block_n)
        bn = _round_up(pl.cdiv(n_aligned, n_tiles), 16)
    n_pad = _round_up(n_aligned, bn)
    if n_pad != N:
        xh = jnp.pad(xh, ((0, n_pad - N), (0, 0)))

    out = pl.pallas_call(
        tanh_gru_cell_kernel,
        out_shape=jax.ShapeDtypeStruct((n_pad, Hp), out_dtype),
        grid=(n_pad // bn,),
        in_specs=[
            pl.BlockSpec((bn, K), lambda i: (i, 0)),         # [x|h] tile (bf16)
            pl.BlockSpec((K, 4 * Hp), lambda i: (0, 0)),     # fused gate weight (resident)
            pl.BlockSpec((Hp, Hp), lambda i: (0, 0)),        # candidate hh weight (resident)
            pl.BlockSpec((1, 4 * Hp), lambda i: (0, 0)),     # fused bias (resident)
        ],
        out_specs=pl.BlockSpec((bn, Hp), lambda i: (i, 0)),  # lane-dense padded output
        compiler_params=pltpu.CompilerParams(
            dimension_semantics=("parallel",),
        ),
    )(xh, w1, whh_n, b_cat)

    # Slice padded batch rows / padded hidden lanes back off.
    return out[:N, :H]


def tanh_gru_cell_ref(x, hx, weight_ih, weight_hh, bias):
    """Pure-JAX f32 reference mirroring the PyTorch forward."""
    z = jax.nn.sigmoid(x @ weight_ih[0].T + hx @ weight_hh[0].T + bias[0])
    r = jax.nn.sigmoid(x @ weight_ih[1].T + hx @ weight_hh[1].T + bias[1])
    n = jnp.tanh(x @ weight_ih[2].T + (hx * r) @ weight_hh[2].T + bias[2])
    return (1.0 - z) * n + z * hx


if __name__ == "__main__":
    input_size = 16
    hidden_size = 32
    batch = 8

    key = jax.random.PRNGKey(0)
    kx, kh, kwi, kwh, kb = jax.random.split(key, 5)

    x = jax.random.normal(kx, (batch, input_size), dtype=jnp.float32)
    hx = jax.random.normal(kh, (batch, hidden_size), dtype=jnp.float32)
    # Deterministic parameter init (synthetic; nn.Parameter(torch.Tensor(...)) is uninitialized).
    weight_ih = 0.1 * jax.random.normal(kwi, (3, hidden_size, input_size), dtype=jnp.float32)
    weight_hh = 0.1 * jax.random.normal(kwh, (3, hidden_size, hidden_size), dtype=jnp.float32)
    bias = 0.1 * jax.random.normal(kb, (3, hidden_size), dtype=jnp.float32)

    # One-time weight fusion (hoisted out of the per-call / per-timestep path).
    fused = prepare_tanh_gru_params(weight_ih, weight_hh, bias)

    out = tanh_gru_cell(x, hx, *fused)
    out = jax.block_until_ready(out)

    ref = tanh_gru_cell_ref(x, hx, weight_ih, weight_hh, bias)
    assert out.shape == (batch, hidden_size)
    # bf16 matmul operands (per perf review) vs. f32 reference -> loosened tolerance.
    assert jnp.allclose(out, ref, rtol=2e-2, atol=2e-2), "mismatch vs reference"

    print("KERNEL_OK")
</pallas_src>

<mosaic_0001>
module attributes {stable_mosaic.version = 11 : i64} {
  func.func @tanh_gru_cell_kernel(%arg0: i32, %arg1: memref<8x48xbf16, #tpu.memory_space<vmem>>, %arg2: memref<48x512xbf16, #tpu.memory_space<vmem>>, %arg3: memref<128x128xbf16, #tpu.memory_space<vmem>>, %arg4: memref<1x512xf32, #tpu.memory_space<vmem>>, %arg5: memref<8x128xf32, #tpu.memory_space<vmem>>) attributes {dimension_semantics = [#tpu.dimension_semantics<parallel>], iteration_bounds = array<i64: 1>, scalar_prefetch = 0 : i64, scratch_operands = 0 : i64, tpu.core_type = #tpu.core_type<tc>, window_params = [{transform_indices = @transform_0, window_bounds = array<i64: 8, 48>}, {pipeline_mode = #tpu.pipeline_mode<synchronous>, transform_indices = @transform_1, window_bounds = array<i64: 48, 512>}, {pipeline_mode = #tpu.pipeline_mode<synchronous>, transform_indices = @transform_2, window_bounds = array<i64: 128, 128>}, {pipeline_mode = #tpu.pipeline_mode<synchronous>, transform_indices = @transform_3, window_bounds = array<i64: 1, 512>}, {transform_indices = @transform_4, window_bounds = array<i64: 8, 128>}]} {
    %c0 = arith.constant 0 : index
    %c0_0 = arith.constant 0 : index
    %0 = vector.load %arg1[%c0, %c0_0] : memref<8x48xbf16, #tpu.memory_space<vmem>>, vector<8x48xbf16>
    %c0_1 = arith.constant 0 : index
    %c0_2 = arith.constant 0 : index
    %1 = vector.load %arg2[%c0_1, %c0_2] : memref<48x512xbf16, #tpu.memory_space<vmem>>, vector<48x512xbf16>
    %cst = arith.constant dense<0.000000e+00> : vector<8x512xf32>
    %2 = tpu.matmul %0, %1, %cst {dimension_numbers = #tpu.dot_dimension_numbers<[1], [0], [0], [1], [0, 0, 1, 1], [], []>} : vector<8x48xbf16>, vector<48x512xbf16>, vector<8x512xf32> -> vector<8x512xf32>
    %c0_3 = arith.constant 0 : index
    %c0_4 = arith.constant 0 : index
    %3 = vector.load %arg4[%c0_3, %c0_4] : memref<1x512xf32, #tpu.memory_space<vmem>>, vector<1x512xf32>
    %4 = vector.broadcast %3 : vector<1x512xf32> to vector<8x512xf32>
    %5 = arith.addf %2, %4 : vector<8x512xf32>
    %6 = vector.extract_strided_slice %5 {offsets = [0, 0], sizes = [8, 128], strides = [1, 1]} : vector<8x512xf32> to vector<8x128xf32>
    %7 = arith.negf %6 : vector<8x128xf32>
    %8 = math.exp %7 : vector<8x128xf32>
    %cst_5 = arith.constant 1.000000e+00 : f32
    %9 = vector.broadcast %cst_5 : f32 to vector<8x128xf32>
    %10 = arith.addf %9, %8 : vector<8x128xf32>
    %11 = arith.divf %9, %10 : vector<8x128xf32>
    %12 = vector.extract_strided_slice %5 {offsets = [0, 128], sizes = [8, 128], strides = [1, 1]} : vector<8x512xf32> to vector<8x128xf32>
    %13 = arith.negf %12 : vector<8x128xf32>
    %14 = math.exp %13 : vector<8x128xf32>
    %cst_6 = arith.constant 1.000000e+00 : f32
    %15 = vector.broadcast %cst_6 : f32 to vector<8x128xf32>
    %16 = arith.addf %15, %14 : vector<8x128xf32>
    %17 = arith.divf %15, %16 : vector<8x128xf32>
    %18 = vector.extract_strided_slice %5 {offsets = [0, 384], sizes = [8, 128], strides = [1, 1]} : vector<8x512xf32> to vector<8x128xf32>
    %19 = arith.mulf %18, %17 : vector<8x128xf32>
    %20 = arith.truncf %19 : vector<8x128xf32> to vector<8x128xbf16>
    %21 = vector.extract_strided_slice %5 {offsets = [0, 256], sizes = [8, 128], strides = [1, 1]} : vector<8x512xf32> to vector<8x128xf32>
    %c0_7 = arith.constant 0 : index
    %c0_8 = arith.constant 0 : index
    %22 = vector.load %arg3[%c0_7, %c0_8] : memref<128x128xbf16, #tpu.memory_space<vmem>>, vector<128x128xbf16>
    %cst_9 = arith.constant dense<0.000000e+00> : vector<8x128xf32>
    %23 = tpu.matmul %20, %22, %cst_9 {dimension_numbers = #tpu.dot_dimension_numbers<[1], [0], [0], [1], [0, 0, 1, 1], [], []>} : vector<8x128xbf16>, vector<128x128xbf16>, vector<8x128xf32> -> vector<8x128xf32>
    %24 = arith.addf %21, %23 : vector<8x128xf32>
    %25 = math.tanh %24 : vector<8x128xf32>
    %cst_10 = arith.constant 1.000000e+00 : f32
    %26 = vector.broadcast %cst_10 : f32 to vector<8x128xf32>
    %27 = arith.subf %26, %11 : vector<8x128xf32>
    %28 = arith.mulf %27, %25 : vector<8x128xf32>
    %29 = arith.mulf %11, %18 : vector<8x128xf32>
    %30 = arith.addf %28, %29 : vector<8x128xf32>
    %c0_11 = arith.constant 0 : index
    %c0_12 = arith.constant 0 : index
    %31 = vector.load %arg5[%c0_11, %c0_12] : memref<8x128xf32, #tpu.memory_space<vmem>>, vector<8x128xf32>
    tpu.vector_store %arg5[%c0_11, %c0_12], %30 {strides = array<i32>} : memref<8x128xf32, #tpu.memory_space<vmem>>, vector<8x128xf32>,
    return
  }
  func.func @transform_0(%arg0: i32) -> (i32, i32) {
    %c0_i32 = arith.constant 0 : i32
    %c0_i32_0 = arith.constant 0 : i32
    return %arg0, %c0_i32 : i32, i32
  }
  func.func @transform_1(%arg0: i32) -> (i32, i32) {
    %c0_i32 = arith.constant 0 : i32
    %c0_i32_0 = arith.constant 0 : i32
    %c0_i32_1 = arith.constant 0 : i32
    return %c0_i32, %c0_i32_0 : i32, i32
  }
  func.func @transform_2(%arg0: i32) -> (i32, i32) {
    %c0_i32 = arith.constant 0 : i32
    %c0_i32_0 = arith.constant 0 : i32
    %c0_i32_1 = arith.constant 0 : i32
    return %c0_i32, %c0_i32_0 : i32, i32
  }
  func.func @transform_3(%arg0: i32) -> (i32, i32) {
    %c0_i32 = arith.constant 0 : i32
    %c0_i32_0 = arith.constant 0 : i32
    %c0_i32_1 = arith.constant 0 : i32
    return %c0_i32, %c0_i32_0 : i32, i32
  }
  func.func @transform_4(%arg0: i32) -> (i32, i32) {
    %c0_i32 = arith.constant 0 : i32
    %c0_i32_0 = arith.constant 0 : i32
    return %arg0, %c0_i32 : i32, i32
  }
}

</mosaic_0001>

<bundles_post_ra>
// kernel: tpu_custom_call.1
= control target key start
LH: loop header
LB: loop body
LE: loop exit
PB: predicated region body
PF: predicated region fallthrough
CT: control target
= control target key end

     0   :  { %9 = vsyncpa [#allocation3], 0  ;;  %s663_s0 = inlined_call_operand.hbm [shape: bf16[8,48], index: 0, kind: input, shape index: {}]   ;;  %s664_s1 = inlined_call_operand.hbm [shape: bf16[48,512], index: 1, kind: input, shape index: {}]   ;;  %s665_s2 = inlined_call_operand.hbm [shape: bf16[128,128], index: 2, kind: input, shape index: {}]   ;;  %s666_s3 = inlined_call_operand.vmem [shape: f32[1,512], index: 3, kind: input, shape index: {}]   ;;  %s667_s4 = inlined_call_operand.hbm [shape: f32[8,128], index: 4, kind: output, shape index: {}]  }
   0x1   :  { %10 = vsyncpa [#allocation6], 0 }
   0x2   :  { %11 = vsyncpa [#allocation4], 0  ;;  %s574_s15 = smov [#allocation5]   ;;  %s480_s19 = scalar_lea.hbm %s664_s1, 1536 }
   0x3   :  { %s27_s16 = sshll.u32 %s574_s15, 4  ;;  %p481_p0 = scmp.ne.s32.totalorder %s664_s1, %s480_s19  ;;  %s28_s16 = int_to_ptr.vmem [resolvable:$true] %s27_s16 }
   0x4   :  { %p484_p1 = scmp.lt.u32.totalorder %s480_s19, %s664_s1 }
   0x6   :  { %p486_p2 = pnand %p484_p1, %p481_p0 }
   0x8   :  { %489 = shalt.err (!%p486_p2)
}
   0x9   :  { %s490_s24 = scalar_lea.vmem %s28_s16, 1536  ;;  %p495_p4 = scmp.lt.s32.totalorder %s28_s16, %s28_s16 }
   0xa   :  { %p491_p3 = scmp.ne.s32.totalorder %s28_s16, %s490_s24  ;;  %p496_p5 = scmp.lt.s32.totalorder %s490_s24, %s490_s24 }
   0xc   :  { %p497_p6 = por %p496_p5, %p495_p4 }
   0xe   :  { %p498_p7 = pnand %p497_p6, %p491_p3 }
  0x10   :  { %501 = shalt.err (!%p498_p7)
}
  0x11   :  { %s575_s25 = smov 256   ;;  %s576_s26 = smov 16  }
  0x12   :  { %33 = dma.hbm_to_vmem [thread:$0]  %s664_s1, 1536, %s28_s16, [#allocation6], %s575_s25, %s575_s25, %s576_s26  }
  0x13   :  { %s577_s29 = smov [#allocation2]   ;;  %s578_s5 = smov [#allocation7]  }
  0x14   :  { %s18_s30 = sshll.u32 %s577_s29, 4  ;;  %s39_s6 = sshll.u32 %s578_s5, 4  ;;  %s19_s30 = int_to_ptr.vmem [resolvable:$true] %s18_s30  ;;  %s40_s6 = int_to_ptr.vmem [resolvable:$true] %s39_s6 }
  0x15   :  { %s502_s9 = scalar_lea.hbm %s663_s0, 64 }
  0x16   :  { %p503_p8 = scmp.ne.s32.totalorder %s663_s0, %s502_s9  ;;  %p506_p9 = scmp.lt.u32.totalorder %s502_s9, %s663_s0 }
  0x18   :  { %p508_p10 = pnand %p506_p9, %p503_p8 }
  0x1a   :  { %511 = shalt.err (!%p508_p10)
}
  0x1b   :  { %s512_s1 = scalar_lea.vmem %s19_s30, 64  ;;  %p517_p12 = scmp.lt.s32.totalorder %s19_s30, %s19_s30 }
  0x1c   :  { %p513_p11 = scmp.ne.s32.totalorder %s19_s30, %s512_s1  ;;  %p518_p13 = scmp.lt.s32.totalorder %s512_s1, %s512_s1 }
  0x1e   :  { %p519_p0 = por %p518_p13, %p517_p12 }
  0x20   :  { %p520_p1 = pnand %p519_p0, %p513_p11 }
  0x22   :  { %523 = shalt.err (!%p520_p1)
}
  0x23   :  { %21 = dma.hbm_to_vmem [thread:$0]  %s663_s0, 64, %s19_s30, [#allocation3]  }
  0x24   :  { %s524_s18 = scalar_lea.hbm %s665_s2, 1024 }
  0x25   :  { %p525_p2 = scmp.ne.s32.totalorder %s665_s2, %s524_s18  ;;  %p528_p3 = scmp.lt.u32.totalorder %s524_s18, %s665_s2 }
  0x27   :  { %p530_p4 = pnand %p528_p3, %p525_p2 }
  0x29   :  { %533 = shalt.err (!%p530_p4)
}
  0x2a   :  { %s534_s23 = scalar_lea.vmem %s40_s6, 1024  ;;  %p539_p6 = scmp.lt.s32.totalorder %s40_s6, %s40_s6 }
  0x2b   :  { %p535_p5 = scmp.ne.s32.totalorder %s40_s6, %s534_s23  ;;  %p540_p7 = scmp.lt.s32.totalorder %s534_s23, %s534_s23 }
  0x2d   :  { %p541_p8 = por %p540_p7, %p539_p6 }
  0x2f   :  { %p542_p9 = pnand %p541_p8, %p535_p5 }
  0x31   :  { %545 = shalt.err (!%p542_p9)
}
  0x32   :  { %s579_s0 = smov 64   ;;  %s580_s24 = smov 4  }
  0x33   :  { %45 = dma.hbm_to_vmem [thread:$0]  %s665_s2, 1024, %s40_s6, [#allocation6], %s579_s0, %s579_s0, %s580_s24  }
  0x34   :  { %568 = dma.done.wait [#allocation3], 64  }
  0x35   :  { %569 = vsyncadd [#allocation3], 4294967232 }
  0x36   :  { %570 = dma.done.wait [#allocation6], 2560  }
  0x37   :  { %571 = vsyncadd [#allocation6], 4294964736  ;;  %v581_v0 = vmov 0   ;;  %v444_v1 = vld [vmem:[#allocation5 + $0x4] ss:$16 sps:$4 sm:$0xff]   ;;  %vm153_vm0 = vcmask 392192   ;;  %v73_v23 = vlaneseq }
  0x38   :  { %189 = vmatprep.mubr.bf16.mxu1 %v581_v0  ;;  %v446_v2 = vld [vmem:[#allocation5] ss:$16 sps:$4 sm:$0xff]   ;;  %157 = vmatprep.subr.bf16.mxu1 %v444_v1  ;;  %v447_v3 = vld [vmem:[#allocation5 + $0x24] ss:$16 sps:$4 sm:$0xff]   ;;  %v455_v7 = vld [vmem:[#allocation5 + $0xc] ss:$16 sps:$4 sm:$0xff]  }
  0x39   :  { %158 = vmatpush1.bf16.msra.mxu1 %v446_v2  ;;  %v449_v4 = vld [vmem:[#allocation5 + $0x20] ss:$16 sps:$4 sm:$0xff]   ;;  %v450_v5 = vld [vmem:[#allocation5 + $0x44] ss:$16 sps:$4 sm:$0xff]   ;;  %v58_v8 = vld [vmem:[#allocation2] sm:$0xf] }
  0x3a   :  { %159 = vmatprep.subr.bf16.mxu1 %v447_v3  ;;  %v452_v6 = vld [vmem:[#allocation5 + $0x40] ss:$16 sps:$4 sm:$0xff]   ;;  %v453_v9 = vld [vmem:[#allocation5 + $0x8] ss:$16 sps:$4 sm:$0xff]   ;;  %v458_v10 = vld [vmem:[#allocation5 + $0x2c] ss:$16 sps:$4 sm:$0xff]  }
  0x3b   :  { %v456_v11 = vld [vmem:[#allocation5 + $0x28] ss:$16 sps:$4 sm:$0xff]   ;;  %v461_v12 = vld [vmem:[#allocation5 + $0x4c] ss:$16 sps:$4 sm:$0xff]   ;;  %v462_v14 = vld [vmem:[#allocation7] sm:$0xff]   ;;  %v582_v15 = vmov 0.0  }
  0x3c   :  { %v459_v13 = vld [vmem:[#allocation5 + $0x48] ss:$16 sps:$4 sm:$0xff]   ;;  %413 = vmatprep.subr.bf16.mxu0 %v582_v15  ;;  %v464_v17 = vld [vmem:[#allocation7 + $0x10] sm:$0xff]   ;;  %v466_v19 = vld [vmem:[#allocation7 + $0x20] sm:$0xff]   ;;  %vm583_vm1 = vmmov 0   ;;  %v74_v24 = vshrl.u32 %v73_v23, 7 }
  0x3d   :  { %160 = vmatpush1.bf16.msra.mxu1 %v449_v4  ;;  %414 = vmatpush3.bf16.msra.mxu0 %v462_v14  ;;  %v463_v16 = vld [vmem:[#allocation7 + $0x8] sm:$0xff]   ;;  %v465_v18 = vld [vmem:[#allocation7 + $0x18] sm:$0xff]   ;;  %v468_v21 = vld [vmem:[#allocation7 + $0x30] sm:$0xff]  }
  0x3e   :  { %161 = vmatprep.subr.bf16.mxu1 %v450_v5  ;;  %415 = vmatprep.subr.bf16.mxu0 %v582_v15  ;;  %v467_v20 = vld [vmem:[#allocation7 + $0x28] sm:$0xff]   ;;  %v469_v22 = vld [vmem:[#allocation7 + $0x38] sm:$0xff]   ;;  %v75_v25 = vsub.s32 0, %v74_v24  ;;  %v79_v27 = vsub.s32 1, %v74_v24  ;;  %v87_v46 = vsub.s32 3, %v74_v24  ;;  %v83_v54 = vsub.s32 2, %v74_v24 }
  0x3f   :  { %429 = vmatprep.mubr.msk.bf16.mxu0 %vm583_vm1, %v582_v15  ;;  %v71_v26 = vld [vmem:[%s666_s3] sm:$0xf]  ;;  %s584_s3 = smov [#allocation8]  }
  0x40   :  { %v76_v28 = vrot.slane %v71_v26, %v75_v25  ;;  %v80_v29 = vrot.slane %v71_v26, %v79_v27  ;;  %v88_v47 = vrot.slane %v71_v26, %v87_v46  ;;  %v84_v55 = vrot.slane %v71_v26, %v83_v54  ;;  %s370_s28 = sshll.u32 %s584_s3, 4  ;;  %s371_s28 = int_to_ptr.vmem [resolvable:$true] %s370_s28 }
  0x41   :  { %162 = vmatpush1.bf16.msra.mxu1 %v452_v6  ;;  %416 = vmatpush3.bf16.msra.mxu0 %v463_v16  ;;  %s546_s29 = scalar_lea.vmem %s371_s28, 128  ;;  %p551_p11 = scmp.lt.s32.totalorder %s371_s28, %s371_s28 }
  0x42   :  { %198 = vmatprep.subr.bf16.mxu1 %v455_v7  ;;  %417 = vmatprep.subr.bf16.mxu0 %v582_v15  ;;  %p547_p10 = scmp.ne.s32.totalorder %s371_s28, %s546_s29  ;;  %p552_p12 = scmp.lt.s32.totalorder %s546_s29, %s546_s29 }
  0x44   :  { %392 = vmatmul.mubr.msk.bf16.vlgmr.msra.gmra.mrb[0].mxu1 %vm153_vm0, %v58_v8  ;;  %p553_p13 = por %p552_p12, %p551_p11 }
  0x45   :  { %199 = vmatpush1.bf16.msra.mxu1 %v453_v9  ;;  %230 = vmatprep.mubr.bf16.mxu1 %v581_v0 }
  0x46   :  { %200 = vmatprep.subr.bf16.mxu1 %v458_v10  ;;  %418 = vmatpush3.bf16.msra.mxu0 %v464_v17  ;;  %p554_p0 = pnand %p553_p13, %p547_p10 }
  0x47   :  { %419 = vmatprep.subr.bf16.mxu0 %v582_v15 }
  0x49   :  { %201 = vmatpush1.bf16.msra.mxu1 %v456_v11 }
  0x4a   :  { %202 = vmatprep.subr.bf16.mxu1 %v461_v12  ;;  %420 = vmatpush3.bf16.msra.mxu0 %v465_v18 }
  0x4b   :  { %421 = vmatprep.subr.bf16.mxu0 %v582_v15 }
  0x4d   :  { %203 = vmatpush1.bf16.msra.mxu1 %v459_v13 }
  0x4e   :  { %422 = vmatpush3.bf16.msra.mxu0 %v466_v19 }
  0x4f   :  { %423 = vmatprep.subr.bf16.mxu0 %v582_v15 }
  0x50   :  { %393 = vmatmul.mubr.msk.bf16.vlgmr.msra.gmra.mrb[4].mxu1 %vm153_vm0, %v58_v8 }
  0x52   :  { %424 = vmatpush3.bf16.msra.mxu0 %v467_v20 }
  0x53   :  { %425 = vmatprep.subr.bf16.mxu0 %v582_v15 }
  0x56   :  { %426 = vmatpush3.bf16.msra.mxu0 %v468_v21 }
  0x57   :  { %427 = vmatprep.subr.bf16.mxu0 %v582_v15 }
  0x5a   :  { %428 = vmatpush3.bf16.msra.mxu0 %v469_v22 }
 0x117   :  { %v191_v30 = vpop.f32.mrb[0].mxu1 }
 0x118   :  { %v192_v31 = vadd.f32 %v191_v30, %v76_v28  ;;  %v193_v32 = vpop.f32.mrb[1].mxu1 }
 0x119   :  { %v194_v33 = vadd.f32 %v193_v32, %v80_v29  ;;  %v195_v34 = vpop.f32.mrb[2].mxu1 }
 0x11a   :  { %v394_v35 = vmul.f32 -1.442695, %v192_v31  ;;  %v196_v36 = vpop.f32.mrb[3].mxu1 }
 0x11b   :  { %v395_v37 = vmul.f32 -1.442695, %v194_v33 }
 0x11c   :  { %470 = vpow2.f32 %v394_v35 }
 0x11d   :  { %472 = vpow2.f32 %v395_v37 }
 0x123   :  { %v232_v38 = vpop.f32.mrb[4].mxu1 }
 0x124   :  { %v234_v39 = vpop.f32.mrb[5].mxu1  ;;  %v233_v56 = vadd.f32 %v232_v38, %v84_v55 }
 0x125   :  { %v236_v40 = vpop.f32.mrb[6].mxu1  ;;  %v235_v48 = vadd.f32 %v234_v39, %v88_v47 }
 0x126   :  { %v471_v41 = vpop.eup %470  ;;  %v237_v42 = vpop.f32.mrb[7].mxu1 }
 0x127   :  { %v473_v43 = vpop.eup %472  ;;  %v242_v44 = vadd.f32 1.0, %v471_v41 }
 0x128   :  { %v248_v45 = vadd.f32 1.0, %v473_v43 }
 0x129   :  { %474 = vrcp.f32 %v242_v44 }
 0x12a   :  { %476 = vrcp.f32 %v248_v45 }
 0x133   :  { %v475_v49 = vpop.eup %474 }
 0x134   :  { %v477_v50 = vpop.eup %476  ;;  %v361_v51 = vmul.f32 %v475_v49, %v235_v48  ;;  %v359_v62 = vsub.f32 1.0, %v475_v49 }
 0x135   :  { %v251_v52 = vmul.f32 %v477_v50, %v235_v48 }
 0x137   :  { %v252_v53 = vpack.c.bf16 %v251_v52, %v251_v52 }
 0x139   :  { %430 = vmatmul.mubr.bf16.vlgmr.msra.gmra.mrb[0].mxu0 %v252_v53 }
 0x20c   :  { %v351_v57 = vpop.f32.mrb[0].mxu0 }
 0x20d   :  { %v357_v58 = vadd.f32 %v351_v57, %v233_v56  ;;  %v431_v59 = vpop.f32.mrb[1].mxu0 }
 0x20e   :  { %v354_v60 = vpop.f32.mrb[2].mxu0 }
 0x20f   :  { %478 = vtanh.f32 %v357_v58  ;;  %v432_v61 = vpop.f32.mrb[3].mxu0 }
 0x219   :  { %v479_v63 = vpop.eup %478 }
 0x21a   :  { %v360_v0 = vmul.f32 %v479_v63, %v359_v62 }
 0x21c   :  { %v362_v1 = vadd.f32 %v361_v51, %v360_v0 }
 0x21e   :  { %363 = vst [vmem:[#allocation8] sm:$0xff] %v362_v1 }
 0x21f   :  { %557 = shalt.err (!%p554_p0)
}
 0x220   :  { %s558_s6 = scalar_lea.hbm %s667_s4, 128 }
 0x221   :  { %p559_p1 = scmp.ne.s32.totalorder %s667_s4, %s558_s6  ;;  %p562_p2 = scmp.lt.u32.totalorder %s558_s6, %s667_s4 }
 0x223   :  { %p564_p3 = pnand %p562_p2, %p559_p1 }
 0x225   :  { %567 = shalt.err (!%p564_p3)
}
 0x226   :  { %373 = dma.vmem_to_hbm [thread:$0]  %s371_s28, 128, %s667_s4, [#allocation4]  }
 0x227   :  { %572 = dma.done.wait [#allocation4], 128  }
 0x228   :  { %573 = vsyncadd [#allocation4], 4294967168 }
 0x229   :  { %377 = vsyncpa [#allocation3], 1 }
 0x22a   :  { %378 = vsyncpa [#allocation6], 1 }
 0x22b   :  { %379 = vsyncpa [#allocation4], 1 }

</bundles_post_ra>
